<compile_context>
chip_gen: v5e
topology: v5e:2x2
jax: 0.10.0
libtpu: 0.0.40
codegen_flags: <defaults>
</compile_context>

<pallas_src>
import jax
import jax.numpy as jnp
from jax import lax
from jax.experimental import pallas as pl
from jax.experimental.pallas import tpu as pltpu


def _round_up(x, m):
    return ((x + m - 1) // m) * m


def _vmem_config():
    """(per-tile budget, vmem_limit_bytes) chosen per TPU generation."""
    phys = 64 * 1024 * 1024
    try:
        info = pltpu.get_tpu_info()
        phys = int(getattr(info, "vmem_capacity_bytes", phys))
    except Exception:
        pass
    if phys >= 100 * 1024 * 1024:                 # v5e / v6e: 128 MiB per core
        return 24 * 1024 * 1024, 64 * 1024 * 1024
    return 10 * 1024 * 1024, 40 * 1024 * 1024     # v7x-class: 64 MiB per core


# ---------------------------------------------------------------------------
# Pallas kernels
# ---------------------------------------------------------------------------

def _pointwise_kernel(x_ref, w_ref, b_ref, o_ref):
    # x_ref: (TP, Cin) bf16, w_ref: (Cin, Cout) bf16, b_ref: (1, Cout) f32
    acc = jnp.dot(x_ref[...], w_ref[...], preferred_element_type=jnp.float32)
    o_ref[...] = (acc + b_ref[...]).astype(o_ref.dtype)


def pointwise_conv(x_flat, w, b, out_dtype, *, tile_p_max=2048):
    """1x1 conv as a row-tiled matmul. x_flat: (P, Cin), w: (Cin, Cout), b: (Cout,)."""
    P, Cin = x_flat.shape
    Cout = w.shape[1]
    _, vmem_limit = _vmem_config()

    P8 = _round_up(P, 8)
    # Largest multiple-of-8 tile <= tile_p_max that divides P8 (avoids pad+crop).
    tile_p = min(tile_p_max, P8)
    tile_p -= tile_p % 8
    tile_p = max(tile_p, 8)
    while tile_p > 8 and (P8 % tile_p):
        tile_p -= 8
    if (P8 % tile_p) or (tile_p < 256 and P8 >= 4 * tile_p_max):
        tile_p = tile_p_max                       # fall back to pad + crop
    # Keep >= 2 grid programs so both TensorCores are fed on dual-core chips.
    if P8 <= tile_p and P8 >= 16:
        tile_p = _round_up(P8 // 2, 8)

    P_pad = _round_up(P8, tile_p)
    x_in = x_flat if P_pad == P else jnp.pad(x_flat, ((0, P_pad - P), (0, 0)))

    out = pl.pallas_call(
        _pointwise_kernel,
        out_shape=jax.ShapeDtypeStruct((P_pad, Cout), out_dtype),
        grid_spec=pltpu.PrefetchScalarGridSpec(
            num_scalar_prefetch=0,
            grid=(P_pad // tile_p,),
            in_specs=[
                pl.BlockSpec((tile_p, Cin), lambda i: (i, 0)),
                pl.BlockSpec((Cin, Cout), lambda i: (0, 0)),
                pl.BlockSpec((1, Cout), lambda i: (0, 0)),
            ],
            out_specs=pl.BlockSpec((tile_p, Cout), lambda i: (i, 0)),
        ),
        compiler_params=pltpu.CompilerParams(
            dimension_semantics=("parallel",),
            vmem_limit_bytes=vmem_limit,
        ),
    )(x_in, w, b.reshape(1, Cout))
    return out[:P] if P_pad != P else out


def _conv3x3_fused_kernel(x_ref, w_ref, b_ref, o_ref):
    # x_ref: (1, 1, TH+2, W2+2, Cin) bf16 halo'd row tile
    # w_ref: (9*Cin, Cout) bf16 fused (conv2 @ conv3) weights, row = (di*3+dj)*Cin+ci
    # b_ref: (1, Cout) f32 fused bias; o_ref: (1, TH, W2, Cout) f32
    TH, W2, Cout = o_ref.shape[1], o_ref.shape[2], o_ref.shape[3]
    Cin = x_ref.shape[4]
    x = x_ref[0, 0]                                    # (TH+2, W2+2, Cin)
    taps = []
    for di in range(3):
        rows = x[di:di + TH]                           # (TH, W2+2, Cin), static slice
        for dj in range(3):
            taps.append(rows[:, dj:dj + W2, :])        # (TH, W2, Cin)
    # im2col patch matrix -> single wide-K matmul with lane-dense 512-wide output.
    patches = jnp.concatenate(taps, axis=-1)           # (TH, W2, 9*Cin) bf16
    patches = patches.reshape(TH * W2, 9 * Cin)
    acc = jnp.dot(patches, w_ref[...], preferred_element_type=jnp.float32)
    acc = acc + b_ref[...]
    o_ref[...] = acc.reshape(1, TH, W2, Cout).astype(o_ref.dtype)


def conv3x3_fused(x_nhwc, w_flat, b, cout, *, row_tile_cap=None):
    """3x3 'same' conv (Cin -> cout) with pre-fused weights, halo row tiling."""
    N, H2, W2, Cin = x_nhwc.shape
    tile_budget, vmem_limit = _vmem_config()
    itm = jnp.dtype(x_nhwc.dtype).itemsize

    # Width padded to a lane/sublane-friendly multiple of 8 (extra cols cropped).
    W2p = _round_up(W2, 8)
    if W2p != W2:
        x_nhwc = jnp.pad(x_nhwc, ((0, 0), (0, 0), (0, W2p - W2), (0, 0)))

    # Per-row VMEM estimate: double-buffered in/out blocks + im2col temporaries
    # (tap slices, lane-padded 144->256 patches) + f32 accumulator.
    per_row = (2 * W2p * cout * 4                      # output block (x2 buffers)
               + W2p * cout * 4                        # f32 accumulator value
               + 2 * (W2p + 2) * Cin * itm             # input block (x2 buffers)
               + 2 * W2p * 9 * Cin * itm               # tap slices + concat
               + W2p * 2 * 128 * itm)                  # lane padding of patches
    fixed = 2 * 9 * Cin * cout * itm + cout * 4 + 4 * (W2p + 2) * Cin * itm
    max_h = int(max(1, min(H2, (tile_budget - fixed) // max(per_row, 1))))
    if row_tile_cap is not None:
        max_h = max(1, min(max_h, int(row_tile_cap)))

    # Largest divisor of H2 that fits -> no bottom padding, no crop copy.
    tile_h = 1
    for d in range(max_h, 0, -1):
        if H2 % d == 0:
            tile_h = d
            break
    # Keep >= 2 grid programs for dual-core chips.
    if N * (H2 // tile_h) < 2:
        for d in range(tile_h // 2, 0, -1):
            if H2 % d == 0:
                tile_h = d
                break
    n_tiles = H2 // tile_h

    # Single halo'd input copy: each tile carries its own 2 extra rows
    # (instead of three full row-shifted copies of the padded input).
    xp = jnp.pad(x_nhwc, ((0, 0), (1, 1), (1, 1), (0, 0)))   # (N, H2+2, W2p+2, Cin)
    row_idx = (jnp.arange(n_tiles)[:, None] * tile_h
               + jnp.arange(tile_h + 2)[None, :])
    xh = xp[:, row_idx]                                       # (N, n_tiles, tile_h+2, W2p+2, Cin)

    out = pl.pallas_call(
        _conv3x3_fused_kernel,
        out_shape=jax.ShapeDtypeStruct((N, H2, W2p, cout), jnp.float32),
        grid_spec=pltpu.PrefetchScalarGridSpec(
            num_scalar_prefetch=0,
            grid=(N, n_tiles),
            in_specs=[
                pl.BlockSpec((1, 1, tile_h + 2, W2p + 2, Cin),
                             lambda n, t: (n, t, 0, 0, 0)),
                pl.BlockSpec((9 * Cin, cout), lambda n, t: (0, 0)),
                pl.BlockSpec((1, cout), lambda n, t: (0, 0)),
            ],
            out_specs=pl.BlockSpec((1, tile_h, W2p, cout),
                                   lambda n, t: (n, t, 0, 0)),
        ),
        compiler_params=pltpu.CompilerParams(
            dimension_semantics=("parallel", "parallel"),
            vmem_limit_bytes=vmem_limit,
        ),
    )(xh, w_flat, b.reshape(1, cout))
    return out[:, :, :W2] if W2p != W2 else out


# ---------------------------------------------------------------------------
# Glue (plain JAX): NHWC-native pixel shuffles (PyTorch PixelShuffle semantics)
# ---------------------------------------------------------------------------

def pixel_shuffle_nhwc(x, r):
    # out[n, h*r+i, w*r+j, c] = x[n, h, w, c*r*r + i*r + j]
    N, H, W, Crr = x.shape
    C = Crr // (r * r)
    x = x.reshape(N, H, W, C, r, r)
    x = x.transpose(0, 1, 4, 2, 5, 3)
    return x.reshape(N, H * r, W * r, C)


def pixel_shuffle_nhwc_to_nchw(x, r):
    # Same semantics, but emit NCHW directly (saves a layout transpose).
    N, H, W, Crr = x.shape
    C = Crr // (r * r)
    x = x.reshape(N, H, W, C, r, r)
    x = x.transpose(0, 3, 1, 4, 2, 5)
    return x.reshape(N, C, H * r, W * r)


def recover_forward(m, params, *, row_tile_cap=None):
    """m: (N, 102, H, W) float32 NCHW -> (N, 8, 32H, 32W) float32 NCHW."""
    N, Cin, H, W = m.shape

    # conv1: 1x1, 102 -> 256 (Cin zero-padded to 128 lanes, bf16 operands).
    x = jnp.transpose(m, (0, 2, 3, 1)).reshape(N * H * W, Cin)
    cin_pad = _round_up(Cin, 128)
    x = jnp.pad(x, ((0, 0), (0, cin_pad - Cin))).astype(jnp.bfloat16)
    w1 = jnp.pad(params["w1"], ((0, cin_pad - Cin), (0, 0))).astype(jnp.bfloat16)
    x = pointwise_conv(x, w1, params["b1"], jnp.bfloat16)        # (N*H*W, 256) bf16
    x = pixel_shuffle_nhwc(x.reshape(N, H, W, 256), 4)           # (N, 4H, 4W, 16) bf16

    # conv2 (3x3, 16->16) fused with conv3's 1x1 (16->512): one 3x3 conv 16->512.
    # Weight pre-contraction in f32, operands cast to bf16, f32 accumulation.
    w23 = jnp.tensordot(params["w2"], params["w3"], axes=([3], [0]))   # (3,3,16,512)
    w23 = w23.reshape(3 * 3 * 16, 512).astype(jnp.bfloat16)
    b23 = params["b2"] @ params["w3"] + params["b3"]                   # (512,) f32
    y = conv3x3_fused(x, w23, b23, 512, row_tile_cap=row_tile_cap)     # (N,4H,4W,512) f32

    # PixelShuffle(8), emitted directly in NCHW (see TODO at file top).
    return pixel_shuffle_nhwc_to_nchw(y, 8)                      # (N, 8, 32H, 32W)


# ---------------------------------------------------------------------------
# Reference (pure JAX/XLA, f32, unfused, original op order) for verification
# ---------------------------------------------------------------------------

def pixel_shuffle_nchw(x, r):
    N, Cr2, H, W = x.shape
    C = Cr2 // (r * r)
    x = x.reshape(N, C, r, r, H, W)
    x = x.transpose(0, 1, 4, 2, 5, 3)
    return x.reshape(N, C, H * r, W * r)


def recover_reference(m, params):
    x = jnp.transpose(m, (0, 2, 3, 1))
    x = jnp.einsum("nhwc,cd->nhwd", x, params["w1"]) + params["b1"]
    x = pixel_shuffle_nchw(jnp.transpose(x, (0, 3, 1, 2)), 4)
    x = jnp.transpose(x, (0, 2, 3, 1))
    x = lax.conv_general_dilated(
        x, params["w2"], window_strides=(1, 1), padding="SAME",
        dimension_numbers=("NHWC", "HWIO", "NHWC")) + params["b2"]
    x = jnp.einsum("nhwc,cd->nhwd", x, params["w3"]) + params["b3"]
    x = pixel_shuffle_nchw(jnp.transpose(x, (0, 3, 1, 2)), 8)
    return x


# ---------------------------------------------------------------------------
# Main
# ---------------------------------------------------------------------------

if __name__ == "__main__":
    key = jax.random.PRNGKey(0)
    k1, k2, k3, k4, k5, k6, kx, ky = jax.random.split(key, 8)

    # Synthetic parameters (shapes per the nn.Conv2d definitions).
    # 1x1 conv weights stored as (Cin, Cout); 3x3 stored as HWIO (3,3,Cin,Cout).
    params = {
        "w1": jax.random.normal(k1, (102, 256), jnp.float32) * 0.05,
        "b1": jax.random.normal(k2, (256,), jnp.float32) * 0.05,
        "w2": jax.random.normal(k3, (3, 3, 16, 16), jnp.float32) * 0.05,
        "b2": jax.random.normal(k4, (16,), jnp.float32) * 0.05,
        "w3": jax.random.normal(k5, (16, 512), jnp.float32) * 0.05,
        "b3": jax.random.normal(k6, (512,), jnp.float32) * 0.05,
    }

    # Test 1: small input consistent with the module: N=2, C=102, H=W=4.
    m = jax.random.normal(kx, (2, 102, 4, 4), jnp.float32)
    out = jax.block_until_ready(recover_forward(m, params))
    assert out.shape == (2, 8, 128, 128), out.shape
    ref = jax.block_until_ready(recover_reference(m, params))
    assert jnp.allclose(out, ref, atol=2e-2, rtol=2e-2), "mismatch vs reference (test 1)"

    # Test 2: N=1, H=W=6 with a forced small row tile -> exercises the
    # multi-tile halo path and the pad+crop path of the pointwise conv.
    m2 = jax.random.normal(ky, (1, 102, 6, 6), jnp.float32)
    out2 = jax.block_until_ready(recover_forward(m2, params, row_tile_cap=6))
    assert out2.shape == (1, 8, 192, 192), out2.shape
    ref2 = jax.block_until_ready(recover_reference(m2, params))
    assert jnp.allclose(out2, ref2, atol=2e-2, rtol=2e-2), "mismatch vs reference (test 2)"

    print("KERNEL_OK")
</pallas_src>

<mosaic_0001>
module attributes {stable_mosaic.version = 11 : i64} {
  func.func @_pointwise_kernel(%arg0: i32, %arg1: memref<16x128xbf16, #tpu.memory_space<vmem>>, %arg2: memref<128x256xbf16, #tpu.memory_space<vmem>>, %arg3: memref<1x256xf32, #tpu.memory_space<vmem>>, %arg4: memref<16x256xbf16, #tpu.memory_space<vmem>>) attributes {dimension_semantics = [#tpu.dimension_semantics<parallel>], iteration_bounds = array<i64: 2>, scalar_prefetch = 0 : i64, scratch_operands = 0 : i64, tpu.core_type = #tpu.core_type<tc>, window_params = [{transform_indices = @transform_0, window_bounds = array<i64: 16, 128>}, {pipeline_mode = #tpu.pipeline_mode<synchronous>, transform_indices = @transform_1, window_bounds = array<i64: 128, 256>}, {pipeline_mode = #tpu.pipeline_mode<synchronous>, transform_indices = @transform_2, window_bounds = array<i64: 1, 256>}, {transform_indices = @transform_3, window_bounds = array<i64: 16, 256>}]} {
    %c0 = arith.constant 0 : index
    %c0_0 = arith.constant 0 : index
    %0 = vector.load %arg1[%c0, %c0_0] : memref<16x128xbf16, #tpu.memory_space<vmem>>, vector<16x128xbf16>
    %c0_1 = arith.constant 0 : index
    %c0_2 = arith.constant 0 : index
    %1 = vector.load %arg2[%c0_1, %c0_2] : memref<128x256xbf16, #tpu.memory_space<vmem>>, vector<128x256xbf16>
    %cst = arith.constant dense<0.000000e+00> : vector<16x256xf32>
    %2 = tpu.matmul %0, %1, %cst {dimension_numbers = #tpu.dot_dimension_numbers<[1], [0], [0], [1], [0, 0, 1, 1], [], []>} : vector<16x128xbf16>, vector<128x256xbf16>, vector<16x256xf32> -> vector<16x256xf32>
    %c0_3 = arith.constant 0 : index
    %c0_4 = arith.constant 0 : index
    %3 = vector.load %arg3[%c0_3, %c0_4] : memref<1x256xf32, #tpu.memory_space<vmem>>, vector<1x256xf32>
    %4 = vector.broadcast %3 : vector<1x256xf32> to vector<16x256xf32>
    %5 = arith.addf %2, %4 : vector<16x256xf32>
    %6 = arith.truncf %5 : vector<16x256xf32> to vector<16x256xbf16>
    %c0_5 = arith.constant 0 : index
    %c0_6 = arith.constant 0 : index
    %7 = vector.load %arg4[%c0_5, %c0_6] : memref<16x256xbf16, #tpu.memory_space<vmem>>, vector<16x256xbf16>
    tpu.vector_store %arg4[%c0_5, %c0_6], %6 {strides = array<i32>} : memref<16x256xbf16, #tpu.memory_space<vmem>>, vector<16x256xbf16>,
    return
  }
  func.func @transform_0(%arg0: i32) -> (i32, i32) {
    %c0_i32 = arith.constant 0 : i32
    %c0_i32_0 = arith.constant 0 : i32
    return %arg0, %c0_i32 : i32, i32
  }
  func.func @transform_1(%arg0: i32) -> (i32, i32) {
    %c0_i32 = arith.constant 0 : i32
    %c0_i32_0 = arith.constant 0 : i32
    %c0_i32_1 = arith.constant 0 : i32
    return %c0_i32, %c0_i32_0 : i32, i32
  }
  func.func @transform_2(%arg0: i32) -> (i32, i32) {
    %c0_i32 = arith.constant 0 : i32
    %c0_i32_0 = arith.constant 0 : i32
    %c0_i32_1 = arith.constant 0 : i32
    return %c0_i32, %c0_i32_0 : i32, i32
  }
  func.func @transform_3(%arg0: i32) -> (i32, i32) {
    %c0_i32 = arith.constant 0 : i32
    %c0_i32_0 = arith.constant 0 : i32
    return %arg0, %c0_i32 : i32, i32
  }
}

</mosaic_0001>

<bundles_post_ra>
// kernel: tpu_custom_call.1
= control target key start
LH: loop header
LB: loop body
LE: loop exit
PB: predicated region body
PF: predicated region fallthrough
CT: control target
= control target key end

     0   :  { %8 = vsyncpa [#allocation3], 0  ;;  %s990_s0 = inlined_call_operand.hbm [shape: bf16[32,128], index: 0, kind: input, shape index: {}]   ;;  %s991_s1 = inlined_call_operand.hbm [shape: bf16[128,256], index: 1, kind: input, shape index: {}]   ;;  %s992_s2 = inlined_call_operand.hbm [shape: f32[1,256], index: 2, kind: input, shape index: {}]   ;;  %s993_s3 = inlined_call_operand.hbm [shape: bf16[32,256], index: 3, kind: output, shape index: {}]  }
   0x1   :  { %10 = vsyncpa [#allocation3 + $0x1], 0 }
   0x2   :  { %11 = vsyncpa [#allocation6], 0 }
   0x3   :  { %12 = vsyncpa [#allocation4], 0 }
   0x4   :  { %14 = vsyncpa [#allocation4 + $0x1], 0  ;;  %s845_s12 = smov 0   ;;  %s847_s13 = smov 0  }
   0x5   :  { %s849_s14 = smov 0   ;;  %s851_s15 = smov 0  }
   0x6 LB: > { %s866_s16 = sadd.s32 4294967295, %s815_s15   ;;  %s475_s17 = sadd.s32 4294967294, %s815_s15   ;;  %s815_s15 = sphi %s851_s15, %s1003_s15   ;;  %s811_s14 = sphi %s849_s14, %s1002_s14   ;;  %s807_s13 = sphi %s847_s13, %s1001_s13   ;;  %s803_s12 = sphi %s845_s12, %s1000_s12  }
   0x7   : > { %p40_p0 = scmp.ne.s32.totalorder %s807_s13, %s803_s12  ;;  %p41_p1 = scmp.eq.s32.totalorder %s866_s16, 0 }
   0x8   : > { %p106_p2 = scmp.eq.s32.totalorder %s866_s16, 1  ;;  %p112_p3 = scmp.eq.s32.totalorder %s475_s17, 1 }
   0x9   : > { %p875_p4 = por %p41_p1, %p40_p0  ;;  %p476_p5 = scmp.ge.s32.totalorder %s815_s15, 1 }
   0xa   : > { %p880_p6 = por %p112_p3, %p40_p0  ;;  %p119_p7 = scmp.lt.s32.totalorder %s815_s15, 3 }
   0xb   : > { %s130_s22 = sshll.u32 %s991_s1, 4  ;;  %s817_s24 = smov [#allocation5]   ;;  %s131_s22 = int_to_ptr.hbm [resolvable:$true] %s130_s22 }
   0xc   : > { %p888_p8 = pnand %p476_p5, %p119_p7  ;;  %s132_s25 = sshll.u32 %s817_s24, 4  ;;  %s133_s25 = int_to_ptr.vmem [resolvable:$true] %s132_s25 }
   0xd   : > { %s145_s28 = sshll.u32 %s992_s2, 4  ;;  %s818_s29 = smov 128   ;;  %s146_s28 = int_to_ptr.hbm [resolvable:$true] %s145_s28 }
   0xe   : > { %p594_p9 = pneg %p888_p8  ;;  %s819_s30 = smov 8  }
   0xf   : > { %s820_s4 = smov [#allocation7]   ;;  %s901_s6 = sadd.s32 1, %s815_s15  }
  0x10   : > { %p595_p10 = pnand %p594_p9, %p41_p1  ;;  %s147_s5 = sshll.u32 %s820_s4, 4  ;;  %s148_s5 = int_to_ptr.vmem [resolvable:$true] %s147_s5 }
  0x11   : > { %s27_s7 = sadd.s32 1, %s811_s14  ;;  %s24_s8 = ssub.s32 %s815_s15, %s901_s6 }
  0x12   : > { %597 = dma.hbm_to_vmem [thread:$0]  (!%p595_p10), %s131_s22, 2048, %s133_s25, [#allocation6], %s818_s29, %s818_s29, %s819_s30  }
  0x13   : > { %600 = dma.hbm_to_vmem [thread:$0]  (!%p595_p10), %s146_s28, 32, %s148_s5, [#allocation6]  }
  0x14   : > { %p34_p12 = scmp.ne.s32.totalorder %s811_s14, %s807_s13  ;;  %p25_p13 = scmp.eq.s32.totalorder %s24_s8, 0 }
  0x15   : > { %p35_p0 = scmp.eq.s32.totalorder %s815_s15, 0  ;;  %p611_p5 = scmp.lt.s32.totalorder %s815_s15, 2 }
  0x16   : > { %p911_p3 = por %p106_p2, %p34_p12  ;;  %s158_s11 = sand.u32 1, %s811_s14  }
  0x17   : > { %s917_s10 = scalar_select %p25_p13, %s811_s14, %s27_s7  }
  0x18   : > { %p36_p7 = por %p35_p0, %p34_p12  ;;  %s480_s17 = sshll.u32 %s158_s11, 3 }
  0x19   : > { %s562_s20 = sshll.u32 %s815_s15, 3  ;;  %s162_s25 = scalar_lea.vmem [#allocation2], %s480_s17 }
  0x1a   : > { %s167_s24 = scalar_lea.hbm %s990_s0, %s562_s20  ;;  %s170_s26 = sshll.u32 %s162_s25, 4  ;;  %s171_s26 = int_to_ptr.vmem [resolvable:$true] %s170_s26 }
  0x1b   : > { %s168_s27 = sshll.u32 %s167_s24, 4  ;;  %p924_p2 = pnand %p611_p5, %p36_p7  ;;  %s169_s27 = int_to_ptr.hbm [resolvable:$true] %s168_s27 }
  0x1c   : > { %s159_s29 = scalar_lea.sflag [#allocation3], %s158_s11  ;;  %s715_s30 = sshra.s32 %s169_s27, 4  ;;  %s716_s30 = int_to_ptr.hbm [resolvable:$true] %s715_s30 }
  0x1d   : > { %s717_s4 = scalar_lea.hbm %s716_s30, 8  ;;  %p719_p10 = pneg %p924_p2 }
  0x1e   : > { %p718_p9 = scmp.ne.s32.totalorder %s716_s30, %s717_s4  ;;  %s722_s8 = scalar_lea.hbm %s990_s0, 16 }
  0x1f   : > { %p723_p0 = scmp.lt.s32.totalorder %s716_s30, %s990_s0  ;;  %p724_p5 = scmp.lt.s32.totalorder %s722_s8, %s717_s4 }
  0x20   : > { %p720_p12 = pnand %p719_p10, %p718_p9 }
  0x21   : > { %p725_p7 = por %p724_p5, %p723_p0 }
  0x22   : > { %p721_p13 = pneg %p720_p12 }
  0x24   : > { %p726_p11 = pnand %p725_p7, %p721_p13 }
  0x26   : > { %729 = shalt.err (!%p726_p11)
}
  0x27   : > { %s821_s11 = smov 64   ;;  %s822_s21 = smov 4  }
  0x28   : > { %604 = dma.hbm_to_vmem [thread:$0]  (!%p924_p2), %s169_s27, 128, %s171_s26, %s159_s29, %s821_s11, %s821_s11, %s822_s21  }
  0x29   : > { %182 = sbr.rel (%p888_p8) target bundleno = 226 (0xe2), region = 32  ;;  %s941_s22 = sand.u32 (!%p888_p8), 1, %s807_s13  }
  0x2a   : > { %s484_s24 = sshll.u32 (!%p888_p8), %s941_s22, 3  ;;  %s185_s25 = scalar_lea.sflag (!%p888_p8), [#allocation3], %s941_s22 }
  0x2b   : > { %s945_s30 = scalar_lea.vmem (!%p888_p8), [#allocation2], %s484_s24 }
  0x2e   : > { %790 = dma.done.wait (%p875_p4), %s185_s25, 128  }
  0x2f   : > { %792 = vsyncadd (%p875_p4), %s185_s25, 4294967168 }
  0x30   : > { %794 = dma.done.wait (%p41_p1), [#allocation6], 2080  }
  0x31   : > { %796 = vsyncadd (%p41_p1), [#allocation6], 4294965216  ;;  %v550_v0 = vld [vmem:[#allocation5 + $0x70] sm:$0xf]  ;;  %v579_v1 = vld [vmem:[#allocation5 + $0x74] sm:$0xf0] }
  0x32   : > { %v578_v2 = vld [vmem:[#allocation5 + $0x74] sm:$0xf]  ;;  %v551_v3 = vor.u32 %v579_v1, %v550_v0  ;;  %v552_v4 = vld [vmem:[#allocation5 + $0x78] sm:$0xf0]  ;;  %v542_v5 = vld [vmem:[#allocation5 + $0x60] sm:$0xf] }
  0x33   : > { %v577_v6 = vld [vmem:[#allocation5 + $0x64] sm:$0xf0]  ;;  %v555_v7 = vor.u32 %v578_v2, %v552_v4  ;;  %v576_v8 = vld [vmem:[#allocation5 + $0x64] sm:$0xf]  ;;  %v544_v9 = vld [vmem:[#allocation5 + $0x68] sm:$0xf0] }
  0x34   : > { %334 = vmatpush.bf16.msra.mxu0 %v551_v3  ;;  %v543_v10 = vor.u32 %v577_v6, %v542_v5  ;;  %v547_v11 = vor.u32 %v576_v8, %v544_v9  ;;  %v534_v12 = vld [vmem:[#allocation5 + $0x50] sm:$0xf]  ;;  %v575_v13 = vld [vmem:[#allocation5 + $0x54] sm:$0xf0]  ;;  %v574_v14 = vld [vmem:[#allocation5 + $0x54] sm:$0xf] }
  0x35   : > { %348 = vmatpush.bf16.msra.mxu1 %v555_v7  ;;  %v536_v15 = vld [vmem:[#allocation5 + $0x58] sm:$0xf0]  ;;  %v535_v16 = vor.u32 %v575_v13, %v534_v12  ;;  %v526_v18 = vld [vmem:[#allocation5 + $0x40] sm:$0xf]  ;;  %v573_v19 = vld [vmem:[#allocation5 + $0x44] sm:$0xf0] }
  0x36   : > { %v539_v17 = vor.u32 %v574_v14, %v536_v15  ;;  %v572_v20 = vld [vmem:[#allocation5 + $0x44] sm:$0xf]  ;;  %v528_v21 = vld [vmem:[#allocation5 + $0x48] sm:$0xf0]  ;;  %v527_v22 = vor.u32 %v573_v19, %v526_v18  ;;  %v518_v24 = vld [vmem:[#allocation5 + $0x30] sm:$0xf] }
  0x37   : > { %v531_v23 = vor.u32 %v572_v20, %v528_v21  ;;  %v571_v25 = vld [vmem:[#allocation5 + $0x34] sm:$0xf0]  ;;  %v570_v26 = vld [vmem:[#allocation5 + $0x34] sm:$0xf]  ;;  %v520_v27 = vld [vmem:[#allocation5 + $0x38] sm:$0xf0] }
  0x38   : > { %335 = vmatpush.bf16.msra.mxu0 %v543_v10  ;;  %v519_v28 = vor.u32 %v571_v25, %v518_v24  ;;  %v523_v29 = vor.u32 %v570_v26, %v520_v27  ;;  %v510_v30 = vld [vmem:[#allocation5 + $0x20] sm:$0xf]  ;;  %v569_v31 = vld [vmem:[#allocation5 + $0x24] sm:$0xf0]  ;;  %v568_v32 = vld [vmem:[#allocation5 + $0x24] sm:$0xf] }
  0x39   : > { %349 = vmatpush.bf16.msra.mxu1 %v547_v11  ;;  %v512_v33 = vld [vmem:[#allocation5 + $0x28] sm:$0xf0]  ;;  %v511_v34 = vor.u32 %v569_v31, %v510_v30  ;;  %v502_v36 = vld [vmem:[#allocation5 + $0x10] sm:$0xf]  ;;  %v567_v37 = vld [vmem:[#allocation5 + $0x14] sm:$0xf0] }
  0x3a   : > { %v515_v35 = vor.u32 %v568_v32, %v512_v33  ;;  %v566_v38 = vld [vmem:[#allocation5 + $0x14] sm:$0xf]  ;;  %v504_v39 = vld [vmem:[#allocation5 + $0x18] sm:$0xf0]  ;;  %v503_v40 = vor.u32 %v567_v37, %v502_v36  ;;  %v494_v42 = vld [vmem:[#allocation5] sm:$0xf] }
  0x3b   : > { %v507_v41 = vor.u32 %v566_v38, %v504_v39  ;;  %v565_v43 = vld [vmem:[#allocation5 + $0x4] sm:$0xf0]  ;;  %v564_v44 = vld [vmem:[#allocation5 + $0x4] sm:$0xf]  ;;  %v496_v45 = vld [vmem:[#allocation5 + $0x8] sm:$0xf0] }
  0x3c   : > { %336 = vmatpush.bf16.msra.mxu0 %v535_v16  ;;  %v495_v46 = vor.u32 %v565_v43, %v494_v42  ;;  %v499_v47 = vor.u32 %v564_v44, %v496_v45  ;;  %v563_v48 = vld [vmem:[%s945_s30] sm:$0xff]  ;;  %v242_v49 = vld [vmem:[#allocation7] sm:$0x3]  ;;  %s487_s18 = sshll.u32 %s941_s22, 4  ;;  %s581_s23 = sshll.u32 %s866_s16, 4 }
  0x3d   : > { %350 = vmatpush.bf16.msra.mxu1 %v539_v17  ;;  %v244_v50 = vperm.slane %v242_v49, 0  ;;  %v245_v51 = vperm.slane %v242_v49, 1  ;;  %s379_s28 = scalar_lea.hbm %s993_s3, %s581_s23  ;;  %s221_s29 = scalar_lea.vmem [#allocation8], %s487_s18 }
  0x3e   : > { %s380_s4 = sshll.u32 %s221_s29, 4  ;;  %s382_s5 = sshll.u32 %s379_s28, 4  ;;  %s381_s4 = int_to_ptr.vmem [resolvable:$true] %s380_s4  ;;  %s383_s5 = int_to_ptr.hbm [resolvable:$true] %s382_s5 }
  0x3f   : > { %s367_s7 = scalar_lea.sflag [#allocation4], %s941_s22  ;;  %s759_s16 = sshra.s32 %s383_s5, 4  ;;  %s760_s16 = int_to_ptr.hbm [resolvable:$true] %s759_s16 }
  0x40   : > { %337 = vmatpush.bf16.msra.mxu0 %v527_v22  ;;  %s761_s8 = scalar_lea.hbm %s760_s16, 16  ;;  %s765_s11 = scalar_lea.hbm %s993_s3, 32 }
  0x41   : > { %351 = vmatpush.bf16.msra.mxu1 %v531_v23  ;;  %p762_p1 = scmp.ne.s32.totalorder %s760_s16, %s761_s8  ;;  %p766_p11 = scmp.lt.s32.totalorder %s760_s16, %s993_s3 }
  0x42   : > { %p767_p2 = scmp.lt.s32.totalorder %s765_s11, %s761_s8 }
  0x43   : > { %p763_p4 = pnand %p762_p1, %p911_p3 }
  0x44   : > { %338 = vmatpush.bf16.msra.mxu0 %v519_v28  ;;  %p768_p9 = por %p767_p2, %p766_p11 }
  0x45   : > { %352 = vmatpush.bf16.msra.mxu1 %v523_v29  ;;  %p764_p8 = pneg %p763_p4 }
  0x47   : > { %p769_p10 = pnand %p768_p9, %p764_p8 }
  0x48   : > { %339 = vmatpush.bf16.msra.mxu0 %v511_v34 }
  0x49   : > { %353 = vmatpush.bf16.msra.mxu1 %v515_v35 }
  0x4c   : > { %340 = vmatpush.bf16.msra.mxu0 %v503_v40 }
  0x4d   : > { %354 = vmatpush.bf16.msra.mxu1 %v507_v41 }
  0x50   : > { %341 = vmatpush.bf16.msra.mxu0 %v495_v46 }
  0x51   : > { %355 = vmatpush.bf16.msra.mxu1 %v499_v47 }
  0x53   : > { %342 = vmatmul.bf16.vlgmr.msra.gmra.mxu0 %v563_v48 }
  0x54   : > { %356 = vmatmul.bf16.vlgmr.msra.gmra.mxu1 %v563_v48 }
  0xd0   : > { %v343_v52 = vpop.f32.mrf.mxu0 }
  0xd1   : > { %v344_v53 = vadd.f32 %v343_v52, %v244_v50  ;;  %v357_v54 = vpop.f32.mrf.mxu1 }
  0xd2   : > { %v358_v55 = vadd.f32 %v357_v54, %v245_v51 }
  0xd4   : > { %v362_v56 = vpack.c.bf16 %v358_v55, %v344_v53 }
  0xd6   : > { %364 = vst [vmem:[%s221_s29] sm:$0xff] %v362_v56 }
  0xd8   : > { %v345_v57 = vpop.f32.mrf.mxu0 }
  0xd9   : > { %v346_v58 = vadd.f32 %v345_v57, %v244_v50  ;;  %v359_v59 = vpop.f32.mrf.mxu1 }
  0xda   : > { %v360_v60 = vadd.f32 %v359_v59, %v245_v51 }
  0xdc   : > { %v363_v61 = vpack.c.bf16 %v360_v60, %v346_v58 }
  0xde   : > { %365 = vst [vmem:[%s221_s29 + $0x8] sm:$0xff] %v363_v61 }
  0xdf   : > { %772 = shalt.err (!%p769_p10)
}
  0xe0   : > { %s823_s22 = smov 128   ;;  %s824_s25 = smov 8  }
  0xe1   : > { %592 = dma.vmem_to_hbm [thread:$0]  (%p911_p3), %s381_s4, 256, %s383_s5, %s367_s7, %s823_s22, %s823_s22, %s824_s25  }
  0xe2 PF: > { %s397_s30 = sand.u32 1, %s803_s12   ;;  %p999_p12 = scmp.ge.s32.totalorder %s815_s15, 2 }
  0xe3   : > { %s398_s18 = scalar_lea.sflag [#allocation4], %s397_s30 }
  0xe4   : > { %p606_p13 = pnand %p999_p12, %p880_p6 }
  0xe6   : > { %p607_p0 = pneg %p606_p13 }
  0xe8   : > { %798 = dma.done.wait (%p607_p0), %s398_s18, 256  }
  0xe9   : > { %800 = vsyncadd (%p607_p0), %s398_s18, 4294967040  ;;  %p17_p5 = scmp.ge.s32.totalorder %s901_s6, 4   ;;  %s1000_s12 = smov %s807_s13 }
  0xea   : > { %s1001_s13 = smov %s811_s14  ;;  %s1002_s14 = smov %s917_s10 }
  0xeb   : > { %s1003_s15 = smov %s901_s6  ;;  %19 = sbr.rel (!%p17_p5) target bundleno = 6 (0x6), region = 85 }
  0xf0   :  { %404 = vsyncpa [#allocation3], 1 }
  0xf1   :  { %406 = vsyncpa [#allocation3 + $0x1], 1 }
  0xf2   :  { %407 = vsyncpa [#allocation6], 1 }
  0xf3   :  { %408 = vsyncpa [#allocation4], 1 }
  0xf4   :  { %410 = vsyncpa [#allocation4 + $0x1], 1 }

</bundles_post_ra>
